<compile_context>
chip_gen: v5e
topology: v5e:2x2
jax: 0.10.0
libtpu: 0.0.40
codegen_flags: <defaults>
</compile_context>

<pallas_src>
import functools

import jax
import jax.numpy as jnp
from jax.experimental import pallas as pl
from jax.experimental.pallas import tpu as pltpu


IN_DIM, HID, OUT_DIM = 8, 50, 4
PAD_B, LANES = 8, 128
SLAB_ROWS = 288

# slab row offsets (all multiples of 8 -> 8-sublane-aligned static slices)
W1_R, W2_R, W3_R = 0, 8, 136
B1_R, B2_R, B3_R = 264, 272, 280


# ---------------------------------------------------------------------------
# Kernel: fused 3-layer MLP + softmax(dim=0). Whole problem fits in VMEM as a
# single block -> gridless call, no pipelining needed.
# ---------------------------------------------------------------------------
def drl_mlp_kernel(x_ref, p_ref, o_ref, *, valid_rows):
    x = x_ref[...]                                                # (8, 8) f32, rows >= B are 0

    w1 = p_ref[W1_R:W1_R + 8,   :].astype(jnp.bfloat16)          # (8,   128)
    w2 = p_ref[W2_R:W2_R + 128, :].astype(jnp.bfloat16)          # (128, 128)
    w3 = p_ref[W3_R:W3_R + 128, :].astype(jnp.bfloat16)          # (128, 128)
    b1 = p_ref[B1_R:B1_R + 1, :]                                  # (1, 128) f32
    b2 = p_ref[B2_R:B2_R + 1, :]
    b3 = p_ref[B3_R:B3_R + 1, :]

    # Linear(8, 50) + ReLU   (bf16 MXU operands, f32 accumulate)
    h1 = jnp.dot(x.astype(jnp.bfloat16), w1,
                 preferred_element_type=jnp.float32) + b1
    h1 = jnp.maximum(h1, 0.0)                                     # (8, 128), cols >= 50 are 0

    # Linear(50, 50) + ReLU
    h2 = jnp.dot(h1.astype(jnp.bfloat16), w2,
                 preferred_element_type=jnp.float32) + b2
    h2 = jnp.maximum(h2, 0.0)

    # Linear(50, 4)
    logits = jnp.dot(h2.astype(jnp.bfloat16), w3,
                     preferred_element_type=jnp.float32) + b3     # (8, 128)

    # nn.Softmax(dim=0): normalize over the batch axis using only valid rows.
    row = jax.lax.broadcasted_iota(jnp.int32, logits.shape, 0)
    logits = jnp.where(row < valid_rows, logits, jnp.float32(-1e30))
    m = jnp.max(logits, axis=0, keepdims=True)
    e = jnp.exp(logits - m)                                       # padded rows -> exactly 0
    s = jnp.sum(e, axis=0, keepdims=True)
    o_ref[...] = e * pl.reciprocal(s, approx=False)               # lane-dense (8,128) store


# ---------------------------------------------------------------------------
# Wrapper
# ---------------------------------------------------------------------------
def pack_params(params):
    """Pack (w1,b1,w2,b2,w3,b3) into one zero-padded (288, 128) f32 slab (build once)."""
    w1, b1, w2, b2, w3, b3 = params
    slab = jnp.zeros((SLAB_ROWS, LANES), jnp.float32)
    slab = slab.at[W1_R:W1_R + IN_DIM, :HID].set(w1)      # (8, 50)
    slab = slab.at[W2_R:W2_R + HID, :HID].set(w2)         # (50, 50)
    slab = slab.at[W3_R:W3_R + HID, :OUT_DIM].set(w3)     # (50, 4)
    slab = slab.at[B1_R, :HID].set(b1)
    slab = slab.at[B2_R, :HID].set(b2)
    slab = slab.at[B3_R, :OUT_DIM].set(b3)
    return slab


def drl_net_forward(x, slab):
    """x: (B, 8) f32, slab: packed params -> (B, 4) f32 softmax over dim 0."""
    B = x.shape[0]
    x_pad = jnp.zeros((PAD_B, IN_DIM), jnp.float32).at[:B, :].set(x)
    vmem = pl.BlockSpec(memory_space=pltpu.MemorySpace.VMEM)
    out = pl.pallas_call(
        functools.partial(drl_mlp_kernel, valid_rows=B),
        out_shape=jax.ShapeDtypeStruct((PAD_B, LANES), jnp.float32),
        in_specs=[vmem, vmem],
        out_specs=vmem,
    )(x_pad, slab)
    return out[:B, :OUT_DIM]


# ---------------------------------------------------------------------------
# Deterministic parameter init (mirrors PyTorch default uniform(-k, k),
# k = 1/sqrt(fan_in)); weights stored as (in, out) so the kernel does x @ w + b.
# ---------------------------------------------------------------------------
def init_params(key):
    def linear(key, fan_in, fan_out):
        kw, kb = jax.random.split(key)
        k = 1.0 / jnp.sqrt(jnp.float32(fan_in))
        w = jax.random.uniform(kw, (fan_in, fan_out), jnp.float32, -k, k)
        b = jax.random.uniform(kb, (fan_out,), jnp.float32, -k, k)
        return w, b

    k1, k2, k3 = jax.random.split(key, 3)
    w1, b1 = linear(k1, IN_DIM, HID)
    w2, b2 = linear(k2, HID, HID)
    w3, b3 = linear(k3, HID, OUT_DIM)
    return (w1, b1, w2, b2, w3, b3)


def reference_forward(x, params, use_bf16_matmul=True):
    w1, b1, w2, b2, w3, b3 = params

    def mm(a, w):
        if use_bf16_matmul:
            return jnp.dot(a.astype(jnp.bfloat16), w.astype(jnp.bfloat16),
                           preferred_element_type=jnp.float32)
        return jnp.dot(a, w, preferred_element_type=jnp.float32)

    h1 = jnp.maximum(mm(x, w1) + b1, 0.0)
    h2 = jnp.maximum(mm(h1, w2) + b2, 0.0)
    logits = mm(h2, w3) + b3
    return jax.nn.softmax(logits, axis=0)     # dim=0, as in nn.Softmax(dim=0)


if __name__ == "__main__":
    key = jax.random.PRNGKey(0)
    kx, kp = jax.random.split(key)

    B = 2
    x = jax.random.normal(kx, (B, IN_DIM), dtype=jnp.float32)
    params = init_params(kp)
    slab = pack_params(params)               # packed once, reused across calls

    fwd = jax.jit(drl_net_forward)
    out = jax.block_until_ready(fwd(x, slab))

    ref_bf16 = reference_forward(x, params, use_bf16_matmul=True)
    ref_f32 = reference_forward(x, params, use_bf16_matmul=False)

    assert out.shape == (B, OUT_DIM)
    assert jnp.allclose(out, ref_bf16, atol=1e-4, rtol=1e-4), "mismatch vs bf16-matmul reference"
    assert jnp.allclose(out, ref_f32, atol=5e-2), "mismatch vs f32 reference (semantics)"
    assert jnp.allclose(out.sum(axis=0), 1.0, atol=1e-5), "softmax(dim=0) columns must sum to 1"

    print("KERNEL_OK")
</pallas_src>

<mosaic_0001>
module attributes {stable_mosaic.version = 11 : i64} {
  func.func @drl_mlp_kernel(%arg0: memref<8x8xf32, #tpu.memory_space<vmem>>, %arg1: memref<288x128xf32, #tpu.memory_space<vmem>>, %arg2: memref<8x128xf32, #tpu.memory_space<vmem>>) attributes {dimension_semantics = [], scalar_prefetch = 0 : i64, scratch_operands = 0 : i64, tpu.core_type = #tpu.core_type<tc>} {
    %c0 = arith.constant 0 : index
    %c0_0 = arith.constant 0 : index
    %0 = vector.load %arg0[%c0, %c0_0] : memref<8x8xf32, #tpu.memory_space<vmem>>, vector<8x8xf32>
    %c0_1 = arith.constant 0 : index
    %c0_2 = arith.constant 0 : index
    %1 = vector.load %arg1[%c0_1, %c0_2] : memref<288x128xf32, #tpu.memory_space<vmem>>, vector<8x128xf32>
    %2 = arith.truncf %1 : vector<8x128xf32> to vector<8x128xbf16>
    %c8 = arith.constant 8 : index
    %c0_3 = arith.constant 0 : index
    %3 = vector.load %arg1[%c8, %c0_3] : memref<288x128xf32, #tpu.memory_space<vmem>>, vector<128x128xf32>
    %4 = arith.truncf %3 : vector<128x128xf32> to vector<128x128xbf16>
    %c136 = arith.constant 136 : index
    %c0_4 = arith.constant 0 : index
    %5 = vector.load %arg1[%c136, %c0_4] : memref<288x128xf32, #tpu.memory_space<vmem>>, vector<128x128xf32>
    %6 = arith.truncf %5 : vector<128x128xf32> to vector<128x128xbf16>
    %c264 = arith.constant 264 : index
    %c0_5 = arith.constant 0 : index
    %7 = vector.load %arg1[%c264, %c0_5] : memref<288x128xf32, #tpu.memory_space<vmem>>, vector<1x128xf32>
    %c272 = arith.constant 272 : index
    %c0_6 = arith.constant 0 : index
    %8 = vector.load %arg1[%c272, %c0_6] : memref<288x128xf32, #tpu.memory_space<vmem>>, vector<1x128xf32>
    %c280 = arith.constant 280 : index
    %c0_7 = arith.constant 0 : index
    %9 = vector.load %arg1[%c280, %c0_7] : memref<288x128xf32, #tpu.memory_space<vmem>>, vector<1x128xf32>
    %10 = arith.truncf %0 : vector<8x8xf32> to vector<8x8xbf16>
    %cst = arith.constant dense<0.000000e+00> : vector<8x128xf32>
    %11 = tpu.matmul %10, %2, %cst {dimension_numbers = #tpu.dot_dimension_numbers<[1], [0], [0], [1], [0, 0, 1, 1], [], []>} : vector<8x8xbf16>, vector<8x128xbf16>, vector<8x128xf32> -> vector<8x128xf32>
    %12 = vector.broadcast %7 : vector<1x128xf32> to vector<8x128xf32>
    %13 = arith.addf %11, %12 : vector<8x128xf32>
    %cst_8 = arith.constant 0.000000e+00 : f32
    %14 = vector.broadcast %cst_8 : f32 to vector<8x128xf32>
    %15 = arith.maximumf %13, %14 : vector<8x128xf32>
    %16 = arith.truncf %15 : vector<8x128xf32> to vector<8x128xbf16>
    %cst_9 = arith.constant dense<0.000000e+00> : vector<8x128xf32>
    %17 = tpu.matmul %16, %4, %cst_9 {dimension_numbers = #tpu.dot_dimension_numbers<[1], [0], [0], [1], [0, 0, 1, 1], [], []>} : vector<8x128xbf16>, vector<128x128xbf16>, vector<8x128xf32> -> vector<8x128xf32>
    %18 = vector.broadcast %8 : vector<1x128xf32> to vector<8x128xf32>
    %19 = arith.addf %17, %18 : vector<8x128xf32>
    %cst_10 = arith.constant 0.000000e+00 : f32
    %20 = vector.broadcast %cst_10 : f32 to vector<8x128xf32>
    %21 = arith.maximumf %19, %20 : vector<8x128xf32>
    %22 = arith.truncf %21 : vector<8x128xf32> to vector<8x128xbf16>
    %cst_11 = arith.constant dense<0.000000e+00> : vector<8x128xf32>
    %23 = tpu.matmul %22, %6, %cst_11 {dimension_numbers = #tpu.dot_dimension_numbers<[1], [0], [0], [1], [0, 0, 1, 1], [], []>} : vector<8x128xbf16>, vector<128x128xbf16>, vector<8x128xf32> -> vector<8x128xf32>
    %24 = vector.broadcast %9 : vector<1x128xf32> to vector<8x128xf32>
    %25 = arith.addf %23, %24 : vector<8x128xf32>
    %26 = tpu.iota {dimensions = array<i32: 0>} : vector<8x128xi32>
    %c2_i32 = arith.constant 2 : i32
    %27 = vector.broadcast %c2_i32 : i32 to vector<8x128xi32>
    %28 = arith.cmpi slt, %26, %27 : vector<8x128xi32>
    %cst_12 = arith.constant -1.000000e+30 : f32
    %29 = vector.broadcast %cst_12 : f32 to vector<8x128xf32>
    %30 = arith.select %28, %25, %29 : vector<8x128xi1>, vector<8x128xf32>
    %cst_13 = arith.constant dense<0xFF800000> : vector<128xf32>
    %31 = vector.multi_reduction <maximumf>, %30, %cst_13 [0] : vector<8x128xf32> to vector<128xf32>
    %32 = vector.shape_cast %31 : vector<128xf32> to vector<1x128xf32>
    %33 = vector.broadcast %32 : vector<1x128xf32> to vector<8x128xf32>
    %34 = arith.subf %30, %33 : vector<8x128xf32>
    %35 = math.exp %34 : vector<8x128xf32>
    %cst_14 = arith.constant dense<0.000000e+00> : vector<128xf32>
    %36 = vector.multi_reduction <add>, %35, %cst_14 [0] : vector<8x128xf32> to vector<128xf32>
    %37 = vector.shape_cast %36 : vector<128xf32> to vector<1x128xf32>
    %38 = tpu.reciprocal %37 : vector<1x128xf32> -> vector<1x128xf32>
    %39 = vector.broadcast %38 : vector<1x128xf32> to vector<8x128xf32>
    %40 = arith.mulf %35, %39 : vector<8x128xf32>
    %c0_15 = arith.constant 0 : index
    %c0_16 = arith.constant 0 : index
    %41 = vector.load %arg2[%c0_15, %c0_16] : memref<8x128xf32, #tpu.memory_space<vmem>>, vector<8x128xf32>
    tpu.vector_store %arg2[%c0_15, %c0_16], %40 {strides = array<i32>} : memref<8x128xf32, #tpu.memory_space<vmem>>, vector<8x128xf32>,
    return
  }
}

</mosaic_0001>

<bundles_post_ra>
// kernel: drl_net_forward.1
= control target key start
LH: loop header
LB: loop body
LE: loop exit
PB: predicated region body
PF: predicated region fallthrough
CT: control target
= control target key end

     0   :  { %7 = vsyncpa [#allocation3], 0  ;;  %s214_s12 = smov [#allocation2]   ;;  %s215_s14 = smov 128   ;;  %s241_s0 = inlined_call_operand.vmem [shape: f32[8,8], index: 0, kind: input, shape index: {}]   ;;  %s242_s1 = inlined_call_operand.hbm [shape: f32[288,128], index: 1, kind: input, shape index: {}]   ;;  %s243_s2 = inlined_call_operand.vmem [shape: f32[8,128], index: 2, kind: output, shape index: {}]  }
   0x1   :  { %s14_s11 = sshll.u32 %s242_s1, 4  ;;  %s16_s13 = sshll.u32 %s214_s12, 4  ;;  %s15_s11 = int_to_ptr.hbm [resolvable:$true] %s14_s11  ;;  %s17_s13 = int_to_ptr.vmem [resolvable:$true] %s16_s13 }
   0x2   :  { %s216_s15 = smov 8  }
   0x3   :  { %22 = dma.hbm_to_vmem [thread:$0]  %s15_s11, 4608, %s17_s13, [#allocation3], %s215_s14, %s215_s14, %s216_s15  }
   0x4   :  { %212 = dma.done.wait [#allocation3], 4608  }
   0x5   :  { %213 = vsyncadd [#allocation3], 4294962688  ;;  %v29_v0 = vld [vmem:[#allocation2] sm:$0xff]  ;;  %vm88_vm0 = vcmask 1043456   ;;  %v45_v2 = vld [vmem:[#allocation2 + $0x78] sm:$0xff]  ;;  %vm84_vm1 = vcmask 64512  }
   0x6   :  { %v28_v1 = vld [vmem:[%s241_s0] sm:$0xff]  ;;  %v30_v3 = vpack.c.bf16 %v29_v0, %v29_v0  ;;  %v43_v5 = vld [vmem:[#allocation2 + $0x68] sm:$0xff]  ;;  %v44_v6 = vld [vmem:[#allocation2 + $0x70] sm:$0xff] }
   0x7   :  { %v46_v4 = vld [vmem:[#allocation2 + $0x80] sm:$0xff]  ;;  %v82_v9 = vpack.c.bf16 %v28_v1, %v28_v1  ;;  %v53_v10 = vpack.c.bf16 %v44_v6, %v43_v5  ;;  %v41_v11 = vld [vmem:[#allocation2 + $0x58] sm:$0xff]  ;;  %v39_v14 = vld [vmem:[#allocation2 + $0x48] sm:$0xff]  ;;  %v137_v1 = vlaneseq }
   0x8   :  { %v54_v7 = vpack.c.bf16 %v46_v4, %v45_v2  ;;  %v90_v8 = vsel %vm88_vm0, %v30_v3, 0  ;;  %v42_v12 = vld [vmem:[#allocation2 + $0x60] sm:$0xff]  ;;  %v40_v15 = vld [vmem:[#allocation2 + $0x50] sm:$0xff]  ;;  %v37_v17 = vld [vmem:[#allocation2 + $0x38] sm:$0xff] }
   0x9   :  { %99 = vmatpush.bf16.msra.mxu0 %v90_v8  ;;  %v52_v13 = vpack.c.bf16 %v42_v12, %v41_v11  ;;  %v51_v16 = vpack.c.bf16 %v40_v15, %v39_v14  ;;  %v38_v18 = vld [vmem:[#allocation2 + $0x40] sm:$0xff]  ;;  %v35_v20 = vld [vmem:[#allocation2 + $0x28] sm:$0xff]  ;;  %v36_v21 = vld [vmem:[#allocation2 + $0x30] sm:$0xff]  ;;  %v138_v2 = vshrl.u32 %v137_v1, 7 }
   0xa   :  { %108 = vmatpush.bf16.msra.mxu1 %v54_v7  ;;  %v50_v19 = vpack.c.bf16 %v38_v18, %v37_v17  ;;  %v49_v22 = vpack.c.bf16 %v36_v21, %v35_v20  ;;  %v33_v23 = vld [vmem:[#allocation2 + $0x18] sm:$0xff]  ;;  %v34_v24 = vld [vmem:[#allocation2 + $0x20] sm:$0xff]  ;;  %v31_v26 = vld [vmem:[#allocation2 + $0x8] sm:$0xff] }
   0xb   :  { %v48_v25 = vpack.c.bf16 %v34_v24, %v33_v23  ;;  %v32_v27 = vld [vmem:[#allocation2 + $0x10] sm:$0xff]  ;;  %v69_v29 = vld [vmem:[#allocation2 + $0xf8] sm:$0xff]  ;;  %v70_v30 = vld [vmem:[#allocation2 + $0x100] sm:$0xff]  ;;  %vm139_vm2 = vcmp.lt.s32.totalorder %v138_v2, 2 }
   0xc   :  { %177 = vmatmul.msk.bf16.vlgmr.msra.gmra.mxu0 %vm84_vm1, %v82_v9  ;;  %v47_v28 = vpack.c.bf16 %v32_v27, %v31_v26  ;;  %v67_v31 = vld [vmem:[#allocation2 + $0xe8] sm:$0xff]  ;;  %v78_v32 = vpack.c.bf16 %v70_v30, %v69_v29  ;;  %v68_v33 = vld [vmem:[#allocation2 + $0xf0] sm:$0xff]  ;;  %v65_v35 = vld [vmem:[#allocation2 + $0xd8] sm:$0xff] }
   0xd   :  { %v77_v34 = vpack.c.bf16 %v68_v33, %v67_v31  ;;  %v66_v36 = vld [vmem:[#allocation2 + $0xe0] sm:$0xff]  ;;  %v63_v38 = vld [vmem:[#allocation2 + $0xc8] sm:$0xff]  ;;  %v64_v39 = vld [vmem:[#allocation2 + $0xd0] sm:$0xff] }
   0xe   :  { %109 = vmatpush.bf16.msra.mxu1 %v53_v10  ;;  %124 = vmatpush.bf16.msra.mxu2 %v78_v32  ;;  %v76_v37 = vpack.c.bf16 %v66_v36, %v65_v35  ;;  %v75_v40 = vpack.c.bf16 %v64_v39, %v63_v38  ;;  %v61_v41 = vld [vmem:[#allocation2 + $0xb8] sm:$0xff]  ;;  %v62_v42 = vld [vmem:[#allocation2 + $0xc0] sm:$0xff]  ;;  %v59_v44 = vld [vmem:[#allocation2 + $0xa8] sm:$0xff] }
   0xf   :  { %v74_v43 = vpack.c.bf16 %v62_v42, %v61_v41  ;;  %v60_v45 = vld [vmem:[#allocation2 + $0xb0] sm:$0xff]  ;;  %v181_v47 = vld [vmem:[#allocation2 + $0x108] ss:$0 sm:$0xff]  ;;  %v57_v53 = vld [vmem:[#allocation2 + $0x98] sm:$0xff] }
  0x10   :  { %v73_v46 = vpack.c.bf16 %v60_v45, %v59_v44  ;;  %v58_v54 = vld [vmem:[#allocation2 + $0xa0] sm:$0xff]  ;;  %v55_v56 = vld [vmem:[#allocation2 + $0x88] sm:$0xff]  ;;  %v56_v57 = vld [vmem:[#allocation2 + $0x90] sm:$0xff] }
  0x11   :  { %v72_v55 = vpack.c.bf16 %v58_v54, %v57_v53  ;;  %v71_v58 = vpack.c.bf16 %v56_v57, %v55_v56  ;;  %v182_v59 = vld [vmem:[#allocation2 + $0x110] ss:$0 sm:$0xff]  ;;  %v183_v3 = vld [vmem:[#allocation2 + $0x118] ss:$0 sm:$0xff] }
  0x12   :  { %110 = vmatpush.bf16.msra.mxu1 %v52_v13  ;;  %125 = vmatpush.bf16.msra.mxu2 %v77_v34 }
  0x16   :  { %111 = vmatpush.bf16.msra.mxu1 %v51_v16  ;;  %126 = vmatpush.bf16.msra.mxu2 %v76_v37 }
  0x1a   :  { %112 = vmatpush.bf16.msra.mxu1 %v50_v19  ;;  %127 = vmatpush.bf16.msra.mxu2 %v75_v40 }
  0x1e   :  { %113 = vmatpush.bf16.msra.mxu1 %v49_v22  ;;  %128 = vmatpush.bf16.msra.mxu2 %v74_v43 }
  0x22   :  { %114 = vmatpush.bf16.msra.mxu1 %v48_v25  ;;  %129 = vmatpush.bf16.msra.mxu2 %v73_v46 }
  0x26   :  { %115 = vmatpush.bf16.msra.mxu1 %v47_v28  ;;  %130 = vmatpush.bf16.msra.mxu2 %v72_v55 }
  0x2a   :  { %131 = vmatpush.bf16.msra.mxu2 %v71_v58 }
  0x89   :  { %v101_v48 = vpop.f32.mrf.mxu0 }
  0x8a   :  { %v102_v49 = vadd.f32 %v181_v47, %v101_v48 }
  0x8c   :  { %v105_v50 = vmax.f32 %v102_v49, 0.0 }
  0x8e   :  { %v106_v51 = vpack.c.bf16 %v105_v50, %v105_v50 }
  0x90   :  { %116 = vmatmul.bf16.vlgmr.msra.gmra.mxu1 %v106_v51 }
  0x91   :  { %v103_v52 = vpop.f32.mrf.mxu0 }
 0x10d   :  { %v117_v60 = vpop.f32.mrf.mxu1 }
 0x10e   :  { %v118_v61 = vadd.f32 %v182_v59, %v117_v60 }
 0x110   :  { %v121_v62 = vmax.f32 %v118_v61, 0.0 }
 0x112   :  { %v122_v63 = vpack.c.bf16 %v121_v62, %v121_v62 }
 0x114   :  { %132 = vmatmul.bf16.vlgmr.msra.gmra.mxu2 %v122_v63 }
 0x115   :  { %v119_v0 = vpop.f32.mrf.mxu1 }
 0x197   :  { %v133_v4 = vpop.f32.mrf.mxu2 }
 0x198   :  { %v134_v5 = vadd.f32 %v183_v3, %v133_v4 }
 0x19a   :  { %v140_v6 = vsel %vm139_vm2, %v134_v5, -1e+30 }
 0x19b   :  { %v141_v7 = vrot.slane %v140_v6, 4 }
 0x19d   :  { %v142_v8 = vmax.f32 %v140_v6, %v141_v7 }
 0x19f   :  { %v143_v9 = vrot.slane %v142_v8, 2  ;;  %v135_v10 = vpop.f32.mrf.mxu2 }
 0x1a1   :  { %v144_v11 = vmax.f32 %v142_v8, %v143_v9 }
 0x1a3   :  { %v145_v12 = vrot.slane %v144_v11, 1 }
 0x1a5   :  { %v146_v13 = vmax.f32 %v144_v11, %v145_v12 }
 0x1a7   :  { %v147_v14 = vsub.f32 %v140_v6, %v146_v13 }
 0x1a9   :  { %v148_v15 = vmul.f32 1.442695, %v147_v14 }
 0x1ab   :  { %184 = vpow2.f32 %v148_v15 }
 0x1b1   :  { %v185_v16 = vpop.eup %184 }
 0x1b2   :  { %v150_v17 = vrot.slane %v185_v16, 4 }
 0x1b4   :  { %v151_v18 = vadd.f32 %v185_v16, %v150_v17 }
 0x1b6   :  { %v152_v19 = vrot.slane %v151_v18, 2 }
 0x1b8   :  { %v153_v20 = vadd.f32 %v152_v19, %v151_v18 }
 0x1ba   :  { %v154_v21 = vrot.slane %v153_v20, 1 }
 0x1bc   :  { %v155_v22 = vadd.f32 %v154_v21, %v153_v20 }
 0x1be   :  { %186 = vrcp.f32 %v155_v22  ;;  %v167_v26 = vand.u32 2147483648, %v155_v22  ;;  %v165_v28 = vand.u32 2147483647, %v155_v22  ;;  %vm161_vm4 = vweird.f32 %v155_v22 }
 0x1c0   :  { %v168_v30 = vor.u32 1.1754944e-38, %v167_v26  ;;  %vm166_vm6 = vcmp.eq.f32.partialorder %v165_v28, 8.507059e+37 }
 0x1c4   :  { %v187_v23 = vpop.eup %186 }
 0x1c5   :  { %v157_v24 = vmul.f32 %v187_v23, %v155_v22  ;;  %vm162_vm3 = vweird.f32 %v187_v23 }
 0x1c6   :  { %vm163_vm5 = vmor %vm161_vm4, %vm162_vm3 }
 0x1c7   :  { %v158_v25 = vsub.f32 1.0, %v157_v24 }
 0x1c9   :  { %v159_v27 = vmul.f32 %v187_v23, %v158_v25 }
 0x1cb   :  { %v160_v29 = vadd.f32 %v187_v23, %v159_v27 }
 0x1cd   :  { %v164_v31 = vsel %vm163_vm5, %v187_v23, %v160_v29 }
 0x1ce   :  { %v169_v32 = vsel %vm166_vm6, %v168_v30, %v164_v31 }
 0x1cf   :  { %v170_v33 = vmul.f32 %v185_v16, %v169_v32 }
 0x1d1   :  { %171 = vst [vmem:[%s243_s2] sm:$0xff] %v170_v33 }
 0x1d2   :  { %176 = vsyncpa [#allocation3], 1 }

</bundles_post_ra>
